<compile_context>
chip_gen: v5e
topology: v5e:2x2
jax: 0.10.0
libtpu: 0.0.40
codegen_flags: <defaults>
</compile_context>

<pallas_src>
import jax
import jax.numpy as jnp
from jax.experimental import pallas as pl
from jax.experimental.pallas import tpu as pltpu

_LANE_ALIGN = 256            # v6e/v7x MXU is 2x256x256; also a multiple of v5e's 128.
_MIB = 1 << 20


def _round_up(v, m):
    return ((v + m - 1) // m) * m


def _sublane_multiple(dtype):
    # Rows per packed sublane group: f32 -> 8, bf16 -> 16, int8/fp8 -> 32.
    return {4: 8, 2: 16, 1: 32}.get(jnp.dtype(dtype).itemsize, 8)


# ----------------------------------------------------------------------------
# Kernels
# ----------------------------------------------------------------------------
def _e2l_kernel(x_ref, w_ref, o_ref):
    """Single-K-block path: x (tb, K) @ w (K, n_pad), then row-normalize."""
    latents = jnp.dot(x_ref[...], w_ref[...], preferred_element_type=jnp.float32)
    # F.normalize(latents, dim=-1), eps=1e-12:
    #   latents / max(||row||, 1e-12) == latents * rsqrt(max(||row||^2, 1e-24))
    sq = jnp.sum(latents * latents, axis=-1, keepdims=True)
    inv = jax.lax.rsqrt(jnp.maximum(sq, 1e-24))
    o_ref[...] = (latents * inv).astype(o_ref.dtype)


def _e2l_kernel_ktiled(x_ref, w_ref, o_ref, acc_ref):
    """K-tiled path: f32 accumulator scratch, normalize once at the last K step."""
    k = pl.program_id(1)
    partial = jnp.dot(x_ref[...], w_ref[...], preferred_element_type=jnp.float32)

    @pl.when(k == 0)
    def _():
        acc_ref[...] = partial

    @pl.when(k > 0)
    def _():
        acc_ref[...] += partial

    @pl.when(k == pl.num_programs(1) - 1)
    def _():
        latents = acc_ref[...]
        sq = jnp.sum(latents * latents, axis=-1, keepdims=True)
        inv = jax.lax.rsqrt(jnp.maximum(sq, 1e-24))
        o_ref[...] = (latents * inv).astype(o_ref.dtype)


# ----------------------------------------------------------------------------
# Weight preparation (do once at parameter-load time)
# ----------------------------------------------------------------------------
def prepare_weight(weight, *, dtype=None, lane_align=_LANE_ALIGN):
    """PyTorch (dim_latents, dim) weight -> canonical (dim, n_pad) matmul layout.

    Zero-padded latent columns do not change the row L2 norm, so padding N up
    to a lane/MXU-friendly multiple is semantics-preserving.  Call once at
    parameter-load time and reuse across forward calls.
    """
    n_latents, _ = weight.shape
    if dtype is not None and weight.dtype != jnp.dtype(dtype):
        weight = weight.astype(dtype)
    n_pad = _round_up(n_latents, lane_align)
    w_t = jnp.transpose(weight)                      # (dim, n_latents)
    if n_pad != n_latents:
        w_t = jnp.pad(w_t, ((0, 0), (0, n_pad - n_latents)))
    return w_t, n_latents


# ----------------------------------------------------------------------------
# Forward pass
# ----------------------------------------------------------------------------
def embed_to_latents_prepared(
    x,
    w_t,
    dim_latents,
    *,
    batch_tile=512,
    out_dtype=None,
    cast_to_bf16=False,
    vmem_budget_bytes=32 * _MIB,
):
    """x: (..., dim); w_t: prepared weight (dim, n_pad). Returns (..., dim_latents)."""
    orig_shape = x.shape
    orig_dtype = x.dtype
    dim = orig_shape[-1]
    out_dtype = out_dtype if out_dtype is not None else orig_dtype

    x2 = x.reshape(-1, dim)
    B = x2.shape[0]

    k_dim, n_pad = w_t.shape
    if k_dim != dim:
        raise ValueError(f"prepared weight K dim {k_dim} != x last dim {dim}")

    if cast_to_bf16:
        x2 = x2.astype(jnp.bfloat16)
    if w_t.dtype != x2.dtype:
        # One common MXU dtype: mixed dtypes silently promote off the fast path.
        w_t = w_t.astype(x2.dtype)

    itemsize = jnp.dtype(x2.dtype).itemsize
    out_itemsize = jnp.dtype(out_dtype).itemsize

    # ---- K (contraction) tiling: bound the VMEM-resident weight block -------
    w_bytes = dim * n_pad * itemsize
    if w_bytes <= 12 * _MIB:
        tk, k_tiles = dim, 1
        w_buffers = 1          # grid-invariant weight -> single VMEM copy
    else:
        tk = max(_LANE_ALIGN,
                 ((8 * _MIB) // (n_pad * itemsize)) // _LANE_ALIGN * _LANE_ALIGN)
        tk = min(tk, _round_up(dim, _LANE_ALIGN))
        dim_p = _round_up(dim, tk)
        if dim_p != dim:
            # TODO(synk): for very large dims, fold this K pad into
            # prepare_weight() as well so it is not a per-call HBM pass.
            x2 = jnp.pad(x2, ((0, 0), (0, dim_p - dim)))
            w_t = jnp.pad(w_t, ((0, dim_p - dim), (0, 0)))
        dim = dim_p
        k_tiles = dim // tk
        w_buffers = 2          # weight block changes per K step -> double-buffer

    # ---- batch tiling --------------------------------------------------------
    sub = _sublane_multiple(x2.dtype)
    tb = _round_up(min(batch_tile, max(B, 1)), sub)
    if B > sub:
        # Keep >= 2 grid steps so v7x's second TensorCore gets work.
        tb = min(tb, _round_up(pl.cdiv(B, 2), sub))
    tb = max(tb, sub)

    def _vmem_needed(tb_):
        x_b = 2 * tb_ * tk * itemsize
        w_b = w_buffers * tk * n_pad * itemsize
        o_b = 2 * tb_ * n_pad * out_itemsize
        acc_b = tb_ * n_pad * 4 if k_tiles > 1 else 0
        return x_b + w_b + o_b + acc_b

    while tb > sub and _vmem_needed(tb) > vmem_budget_bytes:
        tb = max(sub, _round_up(tb // 2, sub))

    b_pad = _round_up(B, tb)
    if b_pad != B:
        x2 = jnp.pad(x2, ((0, b_pad - B), (0, 0)))
    b_tiles = b_pad // tb

    vmem_limit = int(min(64 * _MIB,
                         max(32 * _MIB, _vmem_needed(tb) * 3 // 2 + 4 * _MIB)))

    cost = pl.CostEstimate(
        flops=2 * b_pad * dim * n_pad,
        transcendentals=b_pad,
        bytes_accessed=(x2.size * itemsize + w_t.size * itemsize
                        + b_pad * n_pad * out_itemsize),
    )

    def _run(weight_pipeline_mode):
        w_kwargs = {}
        if weight_pipeline_mode is not None:
            w_kwargs["pipeline_mode"] = weight_pipeline_mode

        if k_tiles == 1:
            grid = (b_tiles,)
            in_specs = [
                pl.BlockSpec((tb, tk), lambda i: (i, 0)),
                pl.BlockSpec((tk, n_pad), lambda i: (0, 0), **w_kwargs),
            ]
            out_specs = pl.BlockSpec((tb, n_pad), lambda i: (i, 0))
            scratch = []
            kernel = _e2l_kernel
            dims = ("parallel",)
        else:
            grid = (b_tiles, k_tiles)
            in_specs = [
                pl.BlockSpec((tb, tk), lambda i, k: (i, k)),
                pl.BlockSpec((tk, n_pad), lambda i, k: (k, 0)),
            ]
            out_specs = pl.BlockSpec((tb, n_pad), lambda i, k: (i, 0))
            scratch = [pltpu.VMEM((tb, n_pad), jnp.float32)]
            kernel = _e2l_kernel_ktiled
            dims = ("parallel", "arbitrary")

        return pl.pallas_call(
            kernel,
            out_shape=jax.ShapeDtypeStruct((b_pad, n_pad), out_dtype),
            grid_spec=pltpu.PrefetchScalarGridSpec(
                num_scalar_prefetch=0,
                grid=grid,
                in_specs=in_specs,
                out_specs=out_specs,
                scratch_shapes=scratch,
            ),
            compiler_params=pltpu.CompilerParams(
                dimension_semantics=dims,
                vmem_limit_bytes=vmem_limit,
            ),
            cost_estimate=cost,
        )(x2, w_t)

    out = None
    if k_tiles == 1 and hasattr(pl, "Buffered"):
        # Single-buffer the grid-invariant weight (halves VMEM residency,
        # matters on v7x's 64 MiB). Fall back if this jax version rejects
        # pipeline_mode on the main pallas_call pipeline.
        try:
            out = _run(pl.Buffered(1))
        except Exception:  # pragma: no cover - compatibility fallback
            out = None
    if out is None:
        out = _run(None)

    out = out[:B, :dim_latents]
    return out.reshape(*orig_shape[:-1], dim_latents)


def embed_to_latents(x, weight, **kwargs):
    """Convenience wrapper taking the PyTorch-layout weight (dim_latents, dim).

    # TODO(synk): in a real deployment call prepare_weight() once at
    # parameter-load time and use embed_to_latents_prepared() per forward call;
    # the per-call transpose/pad here is an extra HBM pass over the weight.
    """
    w_t, n_latents = prepare_weight(weight, dtype=x.dtype)
    return embed_to_latents_prepared(x, w_t, n_latents, **kwargs)


# ----------------------------------------------------------------------------
# Reference + test
# ----------------------------------------------------------------------------
def _reference(x, weight):
    latents = x @ weight.T
    norm = jnp.sqrt(jnp.sum(latents * latents, axis=-1, keepdims=True))
    return latents / jnp.maximum(norm, 1e-12)


if __name__ == "__main__":
    key = jax.random.PRNGKey(0)
    k_x, k_w = jax.random.split(key)

    B, dim, dim_latents = 8, 32, 64

    x = jax.random.normal(k_x, (B, dim), dtype=jnp.float32)
    # Deterministic init of the Linear weight, PyTorch shape (dim_latents, dim).
    bound = 1.0 / (dim ** 0.5)
    weight = jax.random.uniform(
        k_w, (dim_latents, dim), dtype=jnp.float32, minval=-bound, maxval=bound
    )

    out = embed_to_latents(x, weight)
    out = jax.block_until_ready(out)

    ref = _reference(x, weight)
    assert out.shape == (B, dim_latents)
    # Rows must be unit-norm (structural check on the normalization epilogue).
    row_norm = jnp.sqrt(jnp.sum(out.astype(jnp.float32) ** 2, axis=-1))
    assert jnp.allclose(row_norm, 1.0, atol=2e-3), "rows not unit-norm"
    # Tolerance accounts for TPU default (bf16-pass) matmul precision on f32.
    assert jnp.allclose(out, ref, atol=5e-3, rtol=5e-3), "mismatch vs reference"

    print("KERNEL_OK")
</pallas_src>

<mosaic_0001>
module attributes {stable_mosaic.version = 11 : i64} {
  func.func @_e2l_kernel(%arg0: i32, %arg1: memref<8x32xf32, #tpu.memory_space<vmem>>, %arg2: memref<32x256xf32, #tpu.memory_space<vmem>>, %arg3: memref<8x256xf32, #tpu.memory_space<vmem>>) attributes {dimension_semantics = [#tpu.dimension_semantics<parallel>], iteration_bounds = array<i64: 1>, scalar_prefetch = 0 : i64, scratch_operands = 0 : i64, tpu.core_type = #tpu.core_type<tc>, window_params = [{transform_indices = @transform_0, window_bounds = array<i64: 8, 32>}, {pipeline_mode = #tpu.pipeline_mode<synchronous>, transform_indices = @transform_1, window_bounds = array<i64: 32, 256>}, {transform_indices = @transform_2, window_bounds = array<i64: 8, 256>}]} {
    %c0 = arith.constant 0 : index
    %c0_0 = arith.constant 0 : index
    %0 = vector.load %arg1[%c0, %c0_0] : memref<8x32xf32, #tpu.memory_space<vmem>>, vector<8x32xf32>
    %c0_1 = arith.constant 0 : index
    %c0_2 = arith.constant 0 : index
    %1 = vector.load %arg2[%c0_1, %c0_2] : memref<32x256xf32, #tpu.memory_space<vmem>>, vector<32x256xf32>
    %cst = arith.constant dense<0.000000e+00> : vector<8x256xf32>
    %2 = tpu.matmul %0, %1, %cst {dimension_numbers = #tpu.dot_dimension_numbers<[1], [0], [0], [1], [0, 0, 1, 1], [], []>} : vector<8x32xf32>, vector<32x256xf32>, vector<8x256xf32> -> vector<8x256xf32>
    %3 = arith.mulf %2, %2 : vector<8x256xf32>
    %cst_3 = arith.constant dense<0.000000e+00> : vector<8xf32>
    %4 = vector.multi_reduction <add>, %3, %cst_3 [1] : vector<8x256xf32> to vector<8xf32>
    %5 = vector.shape_cast %4 : vector<8xf32> to vector<8x1xf32>
    %cst_4 = arith.constant 1.000000e-24 : f32
    %6 = vector.broadcast %cst_4 : f32 to vector<8x1xf32>
    %7 = arith.maximumf %5, %6 : vector<8x1xf32>
    %8 = math.rsqrt %7 : vector<8x1xf32>
    %9 = vector.broadcast %8 : vector<8x1xf32> to vector<8x256xf32>
    %10 = arith.mulf %2, %9 : vector<8x256xf32>
    %c0_5 = arith.constant 0 : index
    %c0_6 = arith.constant 0 : index
    %11 = vector.load %arg3[%c0_5, %c0_6] : memref<8x256xf32, #tpu.memory_space<vmem>>, vector<8x256xf32>
    tpu.vector_store %arg3[%c0_5, %c0_6], %10 {strides = array<i32>} : memref<8x256xf32, #tpu.memory_space<vmem>>, vector<8x256xf32>,
    return
  }
  func.func @transform_0(%arg0: i32) -> (i32, i32) {
    %c0_i32 = arith.constant 0 : i32
    %c0_i32_0 = arith.constant 0 : i32
    return %arg0, %c0_i32 : i32, i32
  }
  func.func @transform_1(%arg0: i32) -> (i32, i32) {
    %c0_i32 = arith.constant 0 : i32
    %c0_i32_0 = arith.constant 0 : i32
    %c0_i32_1 = arith.constant 0 : i32
    return %c0_i32, %c0_i32_0 : i32, i32
  }
  func.func @transform_2(%arg0: i32) -> (i32, i32) {
    %c0_i32 = arith.constant 0 : i32
    %c0_i32_0 = arith.constant 0 : i32
    return %arg0, %c0_i32 : i32, i32
  }
}

module attributes {stable_mosaic.version = 11 : i64} {
  func.func @_e2l_kernel(%arg0: i32, %arg1: memref<8x32xf32, #tpu.memory_space<vmem>>, %arg2: memref<32x256xf32, #tpu.memory_space<vmem>>, %arg3: memref<8x256xf32, #tpu.memory_space<vmem>>) attributes {dimension_semantics = [#tpu.dimension_semantics<parallel>], iteration_bounds = array<i64: 1>, scalar_prefetch = 0 : i64, scratch_operands = 0 : i64, tpu.core_type = #tpu.core_type<tc>, window_params = [{transform_indices = @transform_0, window_bounds = array<i64: 8, 32>}, {pipeline_mode = #tpu.pipeline_mode<synchronous>, transform_indices = @transform_1, window_bounds = array<i64: 32, 256>}, {transform_indices = @transform_2, window_bounds = array<i64: 8, 256>}]} {
    %c0 = arith.constant 0 : index
    %c0_0 = arith.constant 0 : index
    %0 = vector.load %arg1[%c0, %c0_0] : memref<8x32xf32, #tpu.memory_space<vmem>>, vector<8x32xf32>
    %c0_1 = arith.constant 0 : index
    %c0_2 = arith.constant 0 : index
    %1 = vector.load %arg2[%c0_1, %c0_2] : memref<32x256xf32, #tpu.memory_space<vmem>>, vector<32x256xf32>
    %cst = arith.constant dense<0.000000e+00> : vector<8x256xf32>
    %2 = tpu.matmul %0, %1, %cst {dimension_numbers = #tpu.dot_dimension_numbers<[1], [0], [0], [1], [0, 0, 1, 1], [], []>} : vector<8x32xf32>, vector<32x256xf32>, vector<8x256xf32> -> vector<8x256xf32>
    %3 = arith.mulf %2, %2 : vector<8x256xf32>
    %cst_3 = arith.constant dense<0.000000e+00> : vector<8xf32>
    %4 = vector.multi_reduction <add>, %3, %cst_3 [1] : vector<8x256xf32> to vector<8xf32>
    %5 = vector.shape_cast %4 : vector<8xf32> to vector<8x1xf32>
    %cst_4 = arith.constant 1.000000e-24 : f32
    %6 = vector.broadcast %cst_4 : f32 to vector<8x1xf32>
    %7 = arith.maximumf %5, %6 : vector<8x1xf32>
    %8 = math.rsqrt %7 : vector<8x1xf32>
    %9 = vector.broadcast %8 : vector<8x1xf32> to vector<8x256xf32>
    %10 = arith.mulf %2, %9 : vector<8x256xf32>
    %c0_5 = arith.constant 0 : index
    %c0_6 = arith.constant 0 : index
    %11 = vector.load %arg3[%c0_5, %c0_6] : memref<8x256xf32, #tpu.memory_space<vmem>>, vector<8x256xf32>
    tpu.vector_store %arg3[%c0_5, %c0_6], %10 {strides = array<i32>} : memref<8x256xf32, #tpu.memory_space<vmem>>, vector<8x256xf32>,
    return
  }
  func.func @transform_0(%arg0: i32) -> (i32, i32) {
    %c0_i32 = arith.constant 0 : i32
    %c0_i32_0 = arith.constant 0 : i32
    return %arg0, %c0_i32 : i32, i32
  }
  func.func @transform_1(%arg0: i32) -> (i32, i32) {
    %c0_i32 = arith.constant 0 : i32
    %c0_i32_0 = arith.constant 0 : i32
    %c0_i32_1 = arith.constant 0 : i32
    return %c0_i32, %c0_i32_0 : i32, i32
  }
  func.func @transform_2(%arg0: i32) -> (i32, i32) {
    %c0_i32 = arith.constant 0 : i32
    %c0_i32_0 = arith.constant 0 : i32
    return %arg0, %c0_i32 : i32, i32
  }
}

</mosaic_0001>

<bundles_post_ra>
// kernel: tpu_custom_call.1
= control target key start
LH: loop header
LB: loop body
LE: loop exit
PB: predicated region body
PF: predicated region fallthrough
CT: control target
= control target key end

     0   :  { %7 = vsyncpa [#allocation3], 0  ;;  %s249_s0 = inlined_call_operand.hbm [shape: f32[8,32], index: 0, kind: input, shape index: {}]   ;;  %s250_s1 = inlined_call_operand.hbm [shape: f32[32,256], index: 1, kind: input, shape index: {}]   ;;  %s251_s2 = inlined_call_operand.hbm [shape: f32[8,256], index: 2, kind: output, shape index: {}]  }
   0x1   :  { %8 = vsyncpa [#allocation6], 0 }
   0x2   :  { %9 = vsyncpa [#allocation4], 0  ;;  %s15_s11 = sshll.u32 %s249_s0, 4  ;;  %s220_s12 = smov [#allocation2]   ;;  %s16_s11 = int_to_ptr.hbm [resolvable:$true] %s15_s11 }
   0x3   :  { %s17_s13 = sshll.u32 %s220_s12, 4  ;;  %s25_s16 = sshll.u32 %s250_s1, 4  ;;  %s18_s13 = int_to_ptr.vmem [resolvable:$true] %s17_s13  ;;  %s26_s16 = int_to_ptr.hbm [resolvable:$true] %s25_s16 }
   0x4   :  { %20 = dma.hbm_to_vmem [thread:$0]  %s16_s11, 128, %s18_s13, [#allocation3]  }
   0x5   :  { %s221_s17 = smov [#allocation5]   ;;  %s222_s19 = smov 256  }
   0x6   :  { %s27_s18 = sshll.u32 %s221_s17, 4  ;;  %s223_s20 = smov 16   ;;  %s28_s18 = int_to_ptr.vmem [resolvable:$true] %s27_s18 }
   0x7   :  { %33 = dma.hbm_to_vmem [thread:$0]  %s26_s16, 1024, %s28_s18, [#allocation6], %s222_s19, %s222_s19, %s223_s20  }
   0x8   :  { %214 = dma.done.wait [#allocation3], 128  }
   0x9   :  { %215 = vsyncadd [#allocation3], 4294967168 }
   0xa   :  { %216 = dma.done.wait [#allocation6], 1024  }
   0xb   :  { %217 = vsyncadd [#allocation6], 4294966272  ;;  %v49_v0 = vld [vmem:[#allocation5 + $0x30] sm:$0xff]  ;;  %v50_v1 = vld [vmem:[#allocation5 + $0x38] sm:$0xff]  ;;  %vm51_vm0 = vcmask 261120   ;;  %s224_s0 = smov [#allocation7]  }
   0xc   :  { %v47_v2 = vld [vmem:[#allocation5 + $0x20] sm:$0xff]  ;;  %67 = vmatpush.msra.mxu0 %v49_v0  ;;  %87 = vmatpush.msra.mxu1 %v50_v1  ;;  %v48_v3 = vld [vmem:[#allocation5 + $0x28] sm:$0xff]  ;;  %v45_v4 = vld [vmem:[#allocation5 + $0x10] sm:$0xff]  ;;  %s120_s1 = sshll.u32 %s224_s0, 4  ;;  %s122_s23 = sshll.u32 %s251_s2, 4  ;;  %s121_s1 = int_to_ptr.vmem [resolvable:$true] %s120_s1  ;;  %s123_s23 = int_to_ptr.hbm [resolvable:$true] %s122_s23 }
   0xd   :  { %v46_v5 = vld [vmem:[#allocation5 + $0x18] sm:$0xff]  ;;  %v43_v6 = vld [vmem:[#allocation5] sm:$0xff]  ;;  %v44_v7 = vld [vmem:[#allocation5 + $0x8] sm:$0xff] }
   0xe   :  { %68 = vmatpush.msra.mxu0 %v47_v2  ;;  %88 = vmatpush.msra.mxu1 %v48_v3  ;;  %v42_v8 = vld [vmem:[#allocation2] sm:$0xff] }
  0x10   :  { %69 = vmatpush.msra.mxu0 %v45_v4  ;;  %89 = vmatpush.msra.mxu1 %v46_v5 }
  0x12   :  { %70 = vmatpush.msra.mxu0 %v43_v6  ;;  %90 = vmatpush.msra.mxu1 %v44_v7 }
  0x13   :  { %133 = vmatmul.msk.f32.vlgmr.msra.gmra.mxu0 %vm51_vm0, %v42_v8  ;;  %134 = vmatmul.msk.f32.vlgmr.msra.gmra.mxu1 %vm51_vm0, %v42_v8 }
  0x90   :  { %v72_v9 = vpop.f32.mrf.mxu0  ;;  %v92_v10 = vpop.f32.mrf.mxu1 }
  0x91   :  { %v95_v11 = vmul.f32 %v72_v9, %v72_v9  ;;  %v96_v12 = vmul.f32 %v92_v10, %v92_v10 }
  0x93   :  { %v97_v13 = vadd.f32 %v96_v12, %v95_v11 }
  0x95   :  { %98 = vadd.xlane.f32.xlu0 %v97_v13 }
 0x108   :  { %v99_v14 = vpop.xlane.xlu0 %98 }
 0x109   :  { %v100_v15 = vmax.f32 %v99_v14, 1e-24 }
 0x10b   :  { %140 = vrsqrt.f32 %v100_v15  ;;  %vm107_vm2 = vweird.f32 %v100_v15 }
 0x111   :  { %v141_v16 = vpop.eup %140 }
 0x112   :  { %v102_v17 = vmul.f32 %v141_v16, %v100_v15  ;;  %vm108_vm1 = vweird.f32 %v141_v16 }
 0x113   :  { %vm109_vm3 = vmor %vm107_vm2, %vm108_vm1 }
 0x114   :  { %v103_v18 = vmul.f32 %v141_v16, %v102_v17 }
 0x116   :  { %v104_v19 = vmul.f32 0.5, %v103_v18 }
 0x118   :  { %v105_v20 = vsub.f32 1.5, %v104_v19 }
 0x11a   :  { %v106_v21 = vmul.f32 %v141_v16, %v105_v20 }
 0x11c   :  { %v110_v22 = vsel %vm109_vm3, %v141_v16, %v106_v21 }
 0x11d   :  { %v111_v23 = vmul.f32 %v110_v22, %v72_v9  ;;  %v112_v24 = vmul.f32 %v110_v22, %v92_v10 }
 0x11f   :  { %113 = vst [vmem:[#allocation7] sm:$0xff] %v111_v23 }
 0x120   :  { %114 = vst [vmem:[#allocation7 + $0x8] sm:$0xff] %v112_v24 }
 0x121   :  { %125 = dma.vmem_to_hbm [thread:$0]  %s121_s1, 256, %s123_s23, [#allocation4]  }
 0x122   :  { %218 = dma.done.wait [#allocation4], 256  }
 0x123   :  { %219 = vsyncadd [#allocation4], 4294967040 }
 0x124   :  { %130 = vsyncpa [#allocation3], 1 }
 0x125   :  { %131 = vsyncpa [#allocation6], 1 }
 0x126   :  { %132 = vsyncpa [#allocation4], 1 }

// kernel: tpu_custom_call.1
= control target key start
LH: loop header
LB: loop body
LE: loop exit
PB: predicated region body
PF: predicated region fallthrough
CT: control target
= control target key end

     0   :  { %7 = vsyncpa [#allocation3], 0  ;;  %s249_s0 = inlined_call_operand.hbm [shape: f32[8,32], index: 0, kind: input, shape index: {}]   ;;  %s250_s1 = inlined_call_operand.hbm [shape: f32[32,256], index: 1, kind: input, shape index: {}]   ;;  %s251_s2 = inlined_call_operand.hbm [shape: f32[8,256], index: 2, kind: output, shape index: {}]  }
   0x1   :  { %8 = vsyncpa [#allocation6], 0 }
   0x2   :  { %9 = vsyncpa [#allocation4], 0  ;;  %s15_s11 = sshll.u32 %s249_s0, 4  ;;  %s220_s12 = smov [#allocation2]   ;;  %s16_s11 = int_to_ptr.hbm [resolvable:$true] %s15_s11 }
   0x3   :  { %s17_s13 = sshll.u32 %s220_s12, 4  ;;  %s25_s16 = sshll.u32 %s250_s1, 4  ;;  %s18_s13 = int_to_ptr.vmem [resolvable:$true] %s17_s13  ;;  %s26_s16 = int_to_ptr.hbm [resolvable:$true] %s25_s16 }
   0x4   :  { %20 = dma.hbm_to_vmem [thread:$0]  %s16_s11, 128, %s18_s13, [#allocation3]  }
   0x5   :  { %s221_s17 = smov [#allocation5]   ;;  %s222_s19 = smov 256  }
   0x6   :  { %s27_s18 = sshll.u32 %s221_s17, 4  ;;  %s223_s20 = smov 16   ;;  %s28_s18 = int_to_ptr.vmem [resolvable:$true] %s27_s18 }
   0x7   :  { %33 = dma.hbm_to_vmem [thread:$0]  %s26_s16, 1024, %s28_s18, [#allocation6], %s222_s19, %s222_s19, %s223_s20  }
   0x8   :  { %214 = dma.done.wait [#allocation3], 128  }
   0x9   :  { %215 = vsyncadd [#allocation3], 4294967168 }
   0xa   :  { %216 = dma.done.wait [#allocation6], 1024  }
   0xb   :  { %217 = vsyncadd [#allocation6], 4294966272  ;;  %v49_v0 = vld [vmem:[#allocation5 + $0x30] sm:$0xff]  ;;  %v50_v1 = vld [vmem:[#allocation5 + $0x38] sm:$0xff]  ;;  %vm51_vm0 = vcmask 261120   ;;  %s224_s0 = smov [#allocation7]  }
   0xc   :  { %v47_v2 = vld [vmem:[#allocation5 + $0x20] sm:$0xff]  ;;  %67 = vmatpush.msra.mxu0 %v49_v0  ;;  %87 = vmatpush.msra.mxu1 %v50_v1  ;;  %v48_v3 = vld [vmem:[#allocation5 + $0x28] sm:$0xff]  ;;  %v45_v4 = vld [vmem:[#allocation5 + $0x10] sm:$0xff]  ;;  %s120_s1 = sshll.u32 %s224_s0, 4  ;;  %s122_s23 = sshll.u32 %s251_s2, 4  ;;  %s121_s1 = int_to_ptr.vmem [resolvable:$true] %s120_s1  ;;  %s123_s23 = int_to_ptr.hbm [resolvable:$true] %s122_s23 }
   0xd   :  { %v46_v5 = vld [vmem:[#allocation5 + $0x18] sm:$0xff]  ;;  %v43_v6 = vld [vmem:[#allocation5] sm:$0xff]  ;;  %v44_v7 = vld [vmem:[#allocation5 + $0x8] sm:$0xff] }
   0xe   :  { %68 = vmatpush.msra.mxu0 %v47_v2  ;;  %88 = vmatpush.msra.mxu1 %v48_v3  ;;  %v42_v8 = vld [vmem:[#allocation2] sm:$0xff] }
  0x10   :  { %69 = vmatpush.msra.mxu0 %v45_v4  ;;  %89 = vmatpush.msra.mxu1 %v46_v5 }
  0x12   :  { %70 = vmatpush.msra.mxu0 %v43_v6  ;;  %90 = vmatpush.msra.mxu1 %v44_v7 }
  0x13   :  { %133 = vmatmul.msk.f32.vlgmr.msra.gmra.mxu0 %vm51_vm0, %v42_v8  ;;  %134 = vmatmul.msk.f32.vlgmr.msra.gmra.mxu1 %vm51_vm0, %v42_v8 }
  0x90   :  { %v72_v9 = vpop.f32.mrf.mxu0  ;;  %v92_v10 = vpop.f32.mrf.mxu1 }
  0x91   :  { %v95_v11 = vmul.f32 %v72_v9, %v72_v9  ;;  %v96_v12 = vmul.f32 %v92_v10, %v92_v10 }
  0x93   :  { %v97_v13 = vadd.f32 %v96_v12, %v95_v11 }
  0x95   :  { %98 = vadd.xlane.f32.xlu0 %v97_v13 }
 0x108   :  { %v99_v14 = vpop.xlane.xlu0 %98 }
 0x109   :  { %v100_v15 = vmax.f32 %v99_v14, 1e-24 }
 0x10b   :  { %140 = vrsqrt.f32 %v100_v15  ;;  %vm107_vm2 = vweird.f32 %v100_v15 }
 0x111   :  { %v141_v16 = vpop.eup %140 }
 0x112   :  { %v102_v17 = vmul.f32 %v141_v16, %v100_v15  ;;  %vm108_vm1 = vweird.f32 %v141_v16 }
 0x113   :  { %vm109_vm3 = vmor %vm107_vm2, %vm108_vm1 }
 0x114   :  { %v103_v18 = vmul.f32 %v141_v16, %v102_v17 }
 0x116   :  { %v104_v19 = vmul.f32 0.5, %v103_v18 }
 0x118   :  { %v105_v20 = vsub.f32 1.5, %v104_v19 }
 0x11a   :  { %v106_v21 = vmul.f32 %v141_v16, %v105_v20 }
 0x11c   :  { %v110_v22 = vsel %vm109_vm3, %v141_v16, %v106_v21 }
 0x11d   :  { %v111_v23 = vmul.f32 %v110_v22, %v72_v9  ;;  %v112_v24 = vmul.f32 %v110_v22, %v92_v10 }
 0x11f   :  { %113 = vst [vmem:[#allocation7] sm:$0xff] %v111_v23 }
 0x120   :  { %114 = vst [vmem:[#allocation7 + $0x8] sm:$0xff] %v112_v24 }
 0x121   :  { %125 = dma.vmem_to_hbm [thread:$0]  %s121_s1, 256, %s123_s23, [#allocation4]  }
 0x122   :  { %218 = dma.done.wait [#allocation4], 256  }
 0x123   :  { %219 = vsyncadd [#allocation4], 4294967040 }
 0x124   :  { %130 = vsyncpa [#allocation3], 1 }
 0x125   :  { %131 = vsyncpa [#allocation6], 1 }
 0x126   :  { %132 = vsyncpa [#allocation4], 1 }

</bundles_post_ra>
